<compile_context>
chip_gen: v5e
topology: v5e:2x2
jax: 0.10.0
libtpu: 0.0.40
codegen_flags: <defaults>
</compile_context>

<pallas_src>
import functools

import jax
import jax.numpy as jnp
from jax.experimental import pallas as pl
from jax.experimental.pallas import tpu as pltpu


def _round_up(x, m):
    return ((x + m - 1) // m) * m


@functools.lru_cache(maxsize=1)
def _vmem_capacity_bytes():
    """Per-core VMEM capacity; conservative 64 MiB (v7x) fallback."""
    try:
        return int(pltpu.get_tpu_info().vmem_capacity_bytes)
    except Exception:
        return 64 * 1024 * 1024


def residual_linear_kernel(x_ref, w_ref, b_ref, o_ref):
    # fn(x) + x, fused:
    #   matmul on the MXU with bf16 operands and f32 accumulation,
    #   bias + residual add on the VPU in f32, final cast at the store.
    x = x_ref[...]
    y = jnp.dot(x.astype(jnp.bfloat16), w_ref[...],
                preferred_element_type=jnp.float32)
    y = y + b_ref[...].astype(jnp.float32)          # bias broadcast over rows
    o_ref[...] = (y + x.astype(jnp.float32)).astype(o_ref.dtype)


def _choose_tm(n_rows, d_pad, x_itemsize, w_itemsize, budget):
    """Largest row tile whose double-buffered x/out tiles plus the resident
    single-buffered W/bias fit the per-generation VMEM budget, preferring
    >= 2 grid steps (v7x dual TensorCore) and MXU-friendly multiples."""
    resident = d_pad * d_pad * w_itemsize + d_pad * 4           # W (bf16) + bias (f32)
    per_row = 2 * d_pad * x_itemsize + 2 * d_pad * x_itemsize   # 2 in-bufs + 2 out-bufs
    sub = 8 * max(1, 4 // x_itemsize)                           # sublane packing (8 f32 / 16 bf16)
    cap = max((budget - resident) // per_row, sub)
    tm_max = int(min(cap, 4096))                                # allow big tiles when D is small

    n_ceil = _round_up(n_rows, sub)
    if n_ceil >= 2 * sub:
        # At least two row tiles so v7x's second TensorCore gets work; for
        # small N this also makes the tile divide N (no ragged last block).
        target = min(tm_max, max(n_ceil // 2, sub))
    else:
        target = min(tm_max, n_ceil)

    if target >= 512:
        tm = (target // 256) * 256      # MXU-friendly on v6e/v7x (and /128 for v5e)
    elif target >= 128:
        tm = (target // 128) * 128      # 128-aligned without over-shrinking
    else:
        tm = max((target // sub) * sub, sub)
    return int(tm)


def residual(x, w, b):
    """x: [N, D], w: [D, D], b: [1, D]  ->  [N, D] = (x @ w + b) + x."""
    N, D = x.shape
    out_dtype = x.dtype

    # Lane-dense feature axis: pad only when D is not already a multiple of
    # 128. Padded columns are zero in x, W and b, so they contribute 0 and
    # are sliced off afterwards.
    Dp = _round_up(D, 128)
    pad_d = Dp != D
    if pad_d:
        x = jnp.pad(x, ((0, 0), (0, Dp - D)))
        w = jnp.pad(w, ((0, Dp - D), (0, Dp - D)))
        b = jnp.pad(b, ((0, 0), (0, Dp - D)))

    # One-time D^2 cast of the weights to bf16 (halves HBM read + VMEM
    # residency); bias stays/becomes f32 for the f32 epilogue.
    w = w.astype(jnp.bfloat16)
    b = b.astype(jnp.float32)

    vmem_cap = _vmem_capacity_bytes()
    budget = (vmem_cap * 3) // 4                    # 48 MiB on v7x, 96 MiB on v5e/v6e
    tm = _choose_tm(N, Dp, x.dtype.itemsize, w.dtype.itemsize, budget)

    grid = (pl.cdiv(N, tm),)                        # ragged last row tile handled by Pallas

    # VMEM requirement: resident W/bias (counted twice for safety margin in
    # case the single-buffer request is ignored) + double-buffered x/out
    # tiles, plus a few MiB of headroom for Mosaic internal scratch; never
    # claim more than 7/8 of physical capacity (~56 MiB on v7x).
    resident = Dp * Dp * w.dtype.itemsize + Dp * b.dtype.itemsize
    tile_bytes = 4 * tm * Dp * x.dtype.itemsize
    vmem_limit = int(min((vmem_cap * 7) // 8,
                         max(32 << 20, 2 * resident + tile_bytes + (8 << 20))))

    cost = pl.CostEstimate(
        flops=2 * N * Dp * Dp,
        bytes_accessed=(x.dtype.itemsize * N * Dp           # x read
                        + jnp.dtype(out_dtype).itemsize * N * Dp  # out write
                        + w.dtype.itemsize * Dp * Dp         # W read (bf16)
                        + b.dtype.itemsize * Dp),            # bias read
        transcendentals=0,
    )

    # Note: input_output_aliases={0: 0} could reuse x's HBM buffer for the
    # output when the caller no longer needs x; not done here because the
    # self-test (and typical Residual callers) still read x afterwards.
    out = pl.pallas_call(
        residual_linear_kernel,
        out_shape=jax.ShapeDtypeStruct((N, Dp), out_dtype),
        grid_spec=pltpu.PrefetchScalarGridSpec(
            num_scalar_prefetch=0,
            grid=grid,
            in_specs=[
                # x: tiled over rows, default double-buffering overlaps DMA
                # with compute.
                pl.BlockSpec((tm, Dp), lambda i: (i, 0)),
                # W / bias: constant index_map -> resident across the grid;
                # single-buffered so they do not double their VMEM footprint.
                pl.BlockSpec((Dp, Dp), lambda i: (0, 0),
                             pipeline_mode=pl.Buffered(1)),
                pl.BlockSpec((1, Dp), lambda i: (0, 0),
                             pipeline_mode=pl.Buffered(1)),
            ],
            out_specs=pl.BlockSpec((tm, Dp), lambda i: (i, 0)),
        ),
        compiler_params=pltpu.CompilerParams(
            # Row tiles are independent -> shard across TCs on v7x megacore.
            dimension_semantics=("parallel",),
            vmem_limit_bytes=vmem_limit,
        ),
        cost_estimate=cost,
    )(x, w, b)

    if pad_d:
        out = out[:, :D]
    return out


if __name__ == "__main__":
    key = jax.random.PRNGKey(0)
    kx, kw, kb = jax.random.split(key, 3)

    batch, seq, dim = 2, 8, 128   # lane-dense hidden (multiple of 128)
    x3 = jax.random.normal(kx, (batch, seq, dim), dtype=jnp.float32)
    w = jax.random.normal(kw, (dim, dim), dtype=jnp.float32) * 0.02
    b = jax.random.normal(kb, (1, dim), dtype=jnp.float32) * 0.02

    x = x3.reshape(batch * seq, dim)   # (batch*seq, dim) tokens-by-hidden
    out = residual(x, w, b)
    out = jax.block_until_ready(out)

    # Reference check in plain JAX (fn(x) + x). Tolerance accounts for the
    # bf16 MXU operands (residual path itself is exact f32).
    ref = (x @ w + b) + x
    assert out.shape == ref.shape, "shape mismatch vs reference"
    assert out.dtype == ref.dtype, "dtype mismatch vs reference"
    assert jnp.allclose(out, ref, atol=2e-2, rtol=2e-2), "mismatch vs reference"

    _ = out.reshape(batch, seq, dim)  # restore (batch, seq, dim) convention
    print("KERNEL_OK")
</pallas_src>

<mosaic_0001>
module attributes {stable_mosaic.version = 11 : i64} {
  func.func @residual_linear_kernel(%arg0: i32, %arg1: memref<8x128xf32, #tpu.memory_space<vmem>>, %arg2: memref<128x128xbf16, #tpu.memory_space<vmem>>, %arg3: memref<1x128xf32, #tpu.memory_space<vmem>>, %arg4: memref<8x128xf32, #tpu.memory_space<vmem>>) attributes {dimension_semantics = [#tpu.dimension_semantics<parallel>], iteration_bounds = array<i64: 2>, scalar_prefetch = 0 : i64, scratch_operands = 0 : i64, tpu.core_type = #tpu.core_type<tc>, window_params = [{transform_indices = @transform_0, window_bounds = array<i64: 8, 128>}, {pipeline_mode = #tpu.pipeline_mode<synchronous>, transform_indices = @transform_1, window_bounds = array<i64: 128, 128>}, {pipeline_mode = #tpu.pipeline_mode<synchronous>, transform_indices = @transform_2, window_bounds = array<i64: 1, 128>}, {transform_indices = @transform_3, window_bounds = array<i64: 8, 128>}]} {
    %c0 = arith.constant 0 : index
    %c0_0 = arith.constant 0 : index
    %0 = vector.load %arg1[%c0, %c0_0] : memref<8x128xf32, #tpu.memory_space<vmem>>, vector<8x128xf32>
    %1 = arith.truncf %0 : vector<8x128xf32> to vector<8x128xbf16>
    %c0_1 = arith.constant 0 : index
    %c0_2 = arith.constant 0 : index
    %2 = vector.load %arg2[%c0_1, %c0_2] : memref<128x128xbf16, #tpu.memory_space<vmem>>, vector<128x128xbf16>
    %cst = arith.constant dense<0.000000e+00> : vector<8x128xf32>
    %3 = tpu.matmul %1, %2, %cst {dimension_numbers = #tpu.dot_dimension_numbers<[1], [0], [0], [1], [0, 0, 1, 1], [], []>} : vector<8x128xbf16>, vector<128x128xbf16>, vector<8x128xf32> -> vector<8x128xf32>
    %c0_3 = arith.constant 0 : index
    %c0_4 = arith.constant 0 : index
    %4 = vector.load %arg3[%c0_3, %c0_4] : memref<1x128xf32, #tpu.memory_space<vmem>>, vector<1x128xf32>
    %5 = vector.broadcast %4 : vector<1x128xf32> to vector<8x128xf32>
    %6 = arith.addf %3, %5 : vector<8x128xf32>
    %7 = arith.addf %6, %0 : vector<8x128xf32>
    %c0_5 = arith.constant 0 : index
    %c0_6 = arith.constant 0 : index
    %8 = vector.load %arg4[%c0_5, %c0_6] : memref<8x128xf32, #tpu.memory_space<vmem>>, vector<8x128xf32>
    tpu.vector_store %arg4[%c0_5, %c0_6], %7 {strides = array<i32>} : memref<8x128xf32, #tpu.memory_space<vmem>>, vector<8x128xf32>,
    return
  }
  func.func @transform_0(%arg0: i32) -> (i32, i32) {
    %c0_i32 = arith.constant 0 : i32
    %c0_i32_0 = arith.constant 0 : i32
    return %arg0, %c0_i32 : i32, i32
  }
  func.func @transform_1(%arg0: i32) -> (i32, i32) {
    %c0_i32 = arith.constant 0 : i32
    %c0_i32_0 = arith.constant 0 : i32
    %c0_i32_1 = arith.constant 0 : i32
    return %c0_i32, %c0_i32_0 : i32, i32
  }
  func.func @transform_2(%arg0: i32) -> (i32, i32) {
    %c0_i32 = arith.constant 0 : i32
    %c0_i32_0 = arith.constant 0 : i32
    %c0_i32_1 = arith.constant 0 : i32
    return %c0_i32, %c0_i32_0 : i32, i32
  }
  func.func @transform_3(%arg0: i32) -> (i32, i32) {
    %c0_i32 = arith.constant 0 : i32
    %c0_i32_0 = arith.constant 0 : i32
    return %arg0, %c0_i32 : i32, i32
  }
}

</mosaic_0001>

<bundles_post_ra>
// kernel: tpu_custom_call.1
= control target key start
LH: loop header
LB: loop body
LE: loop exit
PB: predicated region body
PF: predicated region fallthrough
CT: control target
= control target key end

     0   :  { %8 = vsyncpa [#allocation3], 0  ;;  %s798_s0 = inlined_call_operand.hbm [shape: f32[16,128], index: 0, kind: input, shape index: {}]   ;;  %s799_s1 = inlined_call_operand.hbm [shape: bf16[128,128], index: 1, kind: input, shape index: {}]   ;;  %s800_s2 = inlined_call_operand.vmem [shape: f32[1,128], index: 2, kind: input, shape index: {}]   ;;  %s801_s3 = inlined_call_operand.hbm [shape: f32[16,128], index: 3, kind: output, shape index: {}]  }
   0x1   :  { %10 = vsyncpa [#allocation3 + $0x1], 0 }
   0x2   :  { %11 = vsyncpa [#allocation6], 0 }
   0x3   :  { %12 = vsyncpa [#allocation4], 0 }
   0x4   :  { %14 = vsyncpa [#allocation4 + $0x1], 0  ;;  %s655_s12 = smov 0   ;;  %s657_s13 = smov 0  }
   0x5   :  { %s659_s14 = smov 0   ;;  %s661_s15 = smov 0  }
   0x6 LB: > { %s130_s18 = sshll.u32 %s799_s1, 4  ;;  %s679_s19 = sadd.s32 4294967295, %s630_s15   ;;  %s630_s15 = sphi %s661_s15, %s811_s15   ;;  %s626_s14 = sphi %s659_s14, %s810_s14   ;;  %s622_s13 = sphi %s657_s13, %s809_s13   ;;  %s618_s12 = sphi %s655_s12, %s808_s12   ;;  %s131_s18 = int_to_ptr.hbm [resolvable:$true] %s130_s18 }
   0x7   : > { %p387_p0 = scmp.ge.s32.totalorder %s630_s15, 1  ;;  %p41_p1 = scmp.eq.s32.totalorder %s679_s19, 0 }
   0x8   : > { %p119_p2 = scmp.lt.s32.totalorder %s630_s15, 3  ;;  %s632_s21 = smov [#allocation5]  }
   0x9   : > { %s132_s22 = sshll.u32 %s632_s21, 4  ;;  %s633_s23 = smov 64   ;;  %s133_s22 = int_to_ptr.vmem [resolvable:$true] %s132_s22 }
   0xa   : > { %p684_p3 = pnand %p387_p0, %p119_p2  ;;  %s634_s24 = smov 4  }
   0xb   : > { %s386_s25 = sadd.s32 4294967294, %s630_s15   ;;  %s695_s26 = sadd.s32 1, %s630_s15  }
   0xc   : > { %p448_p4 = pneg %p684_p3  ;;  %s27_s27 = sadd.s32 1, %s626_s14 }
   0xd   : > { %s24_s28 = ssub.s32 %s630_s15, %s695_s26  ;;  %p34_p7 = scmp.ne.s32.totalorder %s626_s14, %s622_s13 }
   0xe   : > { %p449_p6 = pnand %p448_p4, %p41_p1  ;;  %p25_p8 = scmp.eq.s32.totalorder %s24_s28, 0 }
   0xf   : > { %p35_p9 = scmp.eq.s32.totalorder %s630_s15, 0  ;;  %p40_p10 = scmp.ne.s32.totalorder %s622_s13, %s618_s12 }
  0x10   : > { %451 = dma.hbm_to_vmem [thread:$0]  (!%p449_p6), %s131_s18, 1024, %s133_s22, [#allocation6], %s633_s23, %s633_s23, %s634_s24  }
  0x11   : > { %p106_p11 = scmp.eq.s32.totalorder %s679_s19, 1  ;;  %p711_p12 = por %p41_p1, %p40_p10 }
  0x12   : > { %s707_s29 = scalar_select %p25_p8, %s626_s14, %s27_s27  }
  0x13   : > { %p715_p13 = por %p106_p11, %p34_p7  ;;  %p112_p0 = scmp.eq.s32.totalorder %s386_s25, 1 }
  0x14   : > { %p36_p2 = por %p35_p9, %p34_p7  ;;  %s149_s5 = sand.u32 1, %s626_s14  }
  0x15   : > { %p720_p4 = por %p112_p0, %p40_p10  ;;  %p461_p6 = scmp.lt.s32.totalorder %s630_s15, 2 }
  0x16   : > { %s390_s7 = sshll.u32 %s149_s5, 3  ;;  %s391_s8 = sshll.u32 %s630_s15, 3 }
  0x17   : > { %s157_s11 = scalar_lea.hbm %s798_s0, %s391_s8  ;;  %s153_s17 = scalar_lea.vmem [#allocation2], %s390_s7 }
  0x18   : > { %s159_s16 = sshll.u32 %s157_s11, 4  ;;  %s161_s18 = sshll.u32 %s153_s17, 4  ;;  %s160_s16 = int_to_ptr.hbm [resolvable:$true] %s159_s16  ;;  %s162_s18 = int_to_ptr.vmem [resolvable:$true] %s161_s18 }
  0x19   : > { %p729_p8 = pnand %p461_p6, %p36_p2  ;;  %s150_s22 = scalar_lea.sflag [#allocation3], %s149_s5 }
  0x1a   : > { %s530_s23 = sshra.s32 %s160_s16, 4  ;;  %s537_s28 = scalar_lea.hbm %s798_s0, 16  ;;  %s531_s23 = int_to_ptr.hbm [resolvable:$true] %s530_s23 }
  0x1b   : > { %s532_s24 = scalar_lea.hbm %s531_s23, 8  ;;  %p534_p9 = pneg %p729_p8 }
  0x1c   : > { %p533_p7 = scmp.ne.s32.totalorder %s531_s23, %s532_s24  ;;  %p538_p0 = scmp.lt.s32.totalorder %s531_s23, %s798_s0 }
  0x1d   : > { %p539_p2 = scmp.lt.s32.totalorder %s537_s28, %s532_s24 }
  0x1e   : > { %p535_p10 = pnand %p534_p9, %p533_p7 }
  0x1f   : > { %p540_p6 = por %p539_p2, %p538_p0 }
  0x20   : > { %p536_p11 = pneg %p535_p10 }
  0x22   : > { %p541_p5 = pnand %p540_p6, %p536_p11 }
  0x24   : > { %544 = shalt.err (!%p541_p5)
}
  0x25   : > { %455 = dma.hbm_to_vmem [thread:$0]  (!%p729_p8), %s160_s16, 128, %s162_s18, %s150_s22  }
  0x26   : > { %170 = sbr.rel (%p684_p3) target bundleno = 212 (0xd4), region = 32  ;;  %s746_s5 = sand.u32 (!%p684_p3), 1, %s622_s13  }
  0x27   : > { %s393_s9 = sshll.u32 (!%p684_p3), %s746_s5, 3  ;;  %s173_s10 = scalar_lea.sflag (!%p684_p3), [#allocation3], %s746_s5 }
  0x28   : > { %s176_s11 = scalar_lea.vmem (!%p684_p3), [#allocation2], %s393_s9 }
  0x2b   : > { %605 = dma.done.wait (%p711_p12), %s173_s10, 128  }
  0x2c   : > { %607 = vsyncadd (%p711_p12), %s173_s10, 4294967168 }
  0x2d   : > { %609 = dma.done.wait (%p41_p1), [#allocation6], 1024  }
  0x2e   : > { %611 = vsyncadd (%p41_p1), [#allocation6], 4294966272  ;;  %v439_v0 = vld [vmem:[#allocation5 + $0x38] sm:$0xff]  ;;  %v438_v1 = vld [vmem:[#allocation5 + $0x30] sm:$0xff]  ;;  %s429_s20 = sshll.u32 %s679_s19, 3  ;;  %s204_s22 = scalar_lea.vmem [#allocation7], %s393_s9 }
  0x2f   : > { %275 = vmatpush.bf16.msra.mxu0 %v439_v0  ;;  %v437_v2 = vld [vmem:[#allocation5 + $0x28] sm:$0xff]  ;;  %v436_v3 = vld [vmem:[#allocation5 + $0x20] sm:$0xff]  ;;  %v435_v4 = vld [vmem:[#allocation5 + $0x18] sm:$0xff]  ;;  %s301_s21 = scalar_lea.hbm %s801_s3, %s429_s20  ;;  %s303_s23 = sshll.u32 %s204_s22, 4  ;;  %s304_s23 = int_to_ptr.vmem [resolvable:$true] %s303_s23 }
  0x30   : > { %v434_v5 = vld [vmem:[#allocation5 + $0x10] sm:$0xff]  ;;  %v433_v6 = vld [vmem:[#allocation5 + $0x8] sm:$0xff]  ;;  %v432_v7 = vld [vmem:[#allocation5] sm:$0xff]  ;;  %s305_s24 = sshll.u32 %s301_s21, 4  ;;  %s291_s19 = scalar_lea.sflag [#allocation4], %s746_s5  ;;  %s306_s24 = int_to_ptr.hbm [resolvable:$true] %s305_s24 }
  0x31   : > { %v205_v8 = vld [vmem:[%s176_s11] sm:$0xff]  ;;  %s574_s25 = sshra.s32 %s306_s24, 4  ;;  %s580_s8 = scalar_lea.hbm %s801_s3, 16  ;;  %s575_s25 = int_to_ptr.hbm [resolvable:$true] %s574_s25 }
  0x32   : > { %v206_v9 = vpack.c.bf16 %v205_v8, %v205_v8  ;;  %v499_v10 = vld [vmem:[%s800_s2] ss:$0 sm:$0xff]  ;;  %s576_s27 = scalar_lea.hbm %s575_s25, 8  ;;  %p581_p12 = scmp.lt.s32.totalorder %s575_s25, %s801_s3 }
  0x33   : > { %276 = vmatpush.bf16.msra.mxu0 %v438_v1  ;;  %p577_p1 = scmp.ne.s32.totalorder %s575_s25, %s576_s27  ;;  %p582_p8 = scmp.lt.s32.totalorder %s580_s8, %s576_s27 }
  0x35   : > { %p578_p3 = pnand %p577_p1, %p715_p13  ;;  %p583_p7 = por %p582_p8, %p581_p12 }
  0x37   : > { %277 = vmatpush.bf16.msra.mxu0 %v437_v2  ;;  %p579_p5 = pneg %p578_p3 }
  0x39   : > { %p584_p9 = pnand %p583_p7, %p579_p5 }
  0x3b   : > { %278 = vmatpush.bf16.msra.mxu0 %v436_v3 }
  0x3f   : > { %279 = vmatpush.bf16.msra.mxu0 %v435_v4 }
  0x43   : > { %280 = vmatpush.bf16.msra.mxu0 %v434_v5 }
  0x47   : > { %281 = vmatpush.bf16.msra.mxu0 %v433_v6 }
  0x4b   : > { %282 = vmatpush.bf16.msra.mxu0 %v432_v7 }
  0x4e   : > { %283 = vmatmul.bf16.vlgmr.msra.gmra.mxu0 %v206_v9 }
  0xcb   : > { %v284_v11 = vpop.f32.mrf.mxu0 }
  0xcc   : > { %v285_v12 = vadd.f32 %v499_v10, %v284_v11 }
  0xce   : > { %v288_v13 = vadd.f32 %v285_v12, %v205_v8 }
  0xd0   : > { %289 = vst [vmem:[%s204_s22] sm:$0xff] %v288_v13 }
  0xd1   : > { %587 = shalt.err (!%p584_p9)
}
  0xd2   : > { %446 = dma.vmem_to_hbm [thread:$0]  (%p715_p13), %s304_s23, 128, %s306_s24, %s291_s19  }
  0xd3   : > { %v286_v14 = vpop.f32.mrf.mxu0 }
  0xd4 PF: > { %s317_s5 = sand.u32 1, %s618_s12   ;;  %p807_p10 = scmp.ge.s32.totalorder %s630_s15, 2 }
  0xd5   : > { %s318_s11 = scalar_lea.sflag [#allocation4], %s317_s5 }
  0xd6   : > { %p457_p11 = pnand %p807_p10, %p720_p4 }
  0xd8   : > { %p458_p0 = pneg %p457_p11 }
  0xda   : > { %613 = dma.done.wait (%p458_p0), %s318_s11, 128  }
  0xdb   : > { %615 = vsyncadd (%p458_p0), %s318_s11, 4294967168  ;;  %p17_p2 = scmp.ge.s32.totalorder %s695_s26, 4   ;;  %s808_s12 = smov %s622_s13 }
  0xdc   : > { %s809_s13 = smov %s626_s14  ;;  %s810_s14 = smov %s707_s29 }
  0xdd   : > { %s811_s15 = smov %s695_s26  ;;  %19 = sbr.rel (!%p17_p2) target bundleno = 6 (0x6), region = 81 }
  0xe2   :  { %324 = vsyncpa [#allocation3], 1 }
  0xe3   :  { %326 = vsyncpa [#allocation3 + $0x1], 1 }
  0xe4   :  { %327 = vsyncpa [#allocation6], 1 }
  0xe5   :  { %328 = vsyncpa [#allocation4], 1 }
  0xe6   :  { %330 = vsyncpa [#allocation4 + $0x1], 1 }

</bundles_post_ra>
